<compile_context>
chip_gen: v5e
topology: v5e:2x2
jax: 0.10.0
libtpu: 0.0.40
codegen_flags: <defaults>
</compile_context>

<pallas_src>
import jax
import jax.numpy as jnp
from jax.experimental import pallas as pl
from jax.experimental.pallas import tpu as pltpu


def _net_kernel(x_ref, w_ref, b_ref, o_ref):
    # x_ref: (TB, L) VMEM   packed inputs (L = P*D lanes)
    # w_ref: (L, P)  VMEM   block-diagonal weight (w on each diagonal block)
    # b_ref: (1, 1)  SMEM   bias scalar
    # o_ref: (TB, P) VMEM   sigmoid(x @ w + b), P original rows per packed row
    z = jnp.dot(x_ref[...], w_ref[...], preferred_element_type=jnp.float32)
    z = z + b_ref[0, 0]
    o_ref[...] = jax.nn.sigmoid(z).astype(o_ref.dtype)


def net_forward(x, w, b, *, block_rows=4096):
    """Pallas equivalent of Net.forward.

    x: (B, 4, n_cols) or (4, n_cols) / flat (B, D) / (D,)
    w: (D, 1)  -- transposed PyTorch Linear weight, D = 4*n_cols
    b: (1,)    -- PyTorch Linear bias
    block_rows: packed-row tile size (multiple of 8). 4096 is safe on
                v5e/v6e/v7x; larger values help v5e/v6e, smaller suit v7x VMEM.
    """
    x = jnp.asarray(x, jnp.float32)
    w = jnp.asarray(w, jnp.float32)
    b = jnp.asarray(b, jnp.float32)
    if x.ndim == 1:
        x = x[None, :]
    x = x.reshape(x.shape[0], -1)            # torch.flatten(start_dim=1)
    B, D = x.shape
    assert w.shape == (D, 1), (w.shape, D)

    # ---- lane packing: P original rows per 128-lane packed row (free reshape)
    P = 128 // D if (D <= 128 and 128 % D == 0) else 1
    L = P * D
    R = pl.cdiv(B, P)                        # packed rows
    pad = R * P - B
    if pad:
        x = jnp.concatenate([x, jnp.zeros((pad, D), jnp.float32)], axis=0)
    xp = x.reshape(R, L)                     # contiguous row-major -> no copy

    # block-diagonal weight so the packed contraction equals the per-row GEMV
    w_seg = w if P == 1 else jnp.kron(jnp.eye(P, dtype=jnp.float32), w)  # (L,P)
    b2 = b.reshape(1, 1)

    TB = min(block_rows, R)                  # == R (full extent) for small B
    grid = (pl.cdiv(R, TB),)                 # partial last tile handled by Pallas

    cost = pl.CostEstimate(
        flops=2 * R * L * P,
        transcendentals=R * P,
        bytes_accessed=R * L * 4 + L * P * 4 + R * P * 4,
    )

    out_p = pl.pallas_call(
        _net_kernel,
        out_shape=jax.ShapeDtypeStruct((R, P), jnp.float32),
        grid=grid,
        in_specs=[
            pl.BlockSpec((TB, L), lambda i: (i, 0)),                       # x tiles
            pl.BlockSpec((L, P), lambda i: (0, 0)),                        # weight (resident)
            pl.BlockSpec(memory_space=pltpu.MemorySpace.SMEM),             # bias scalar
        ],
        out_specs=pl.BlockSpec((TB, P), lambda i: (i, 0)),
        compiler_params=pltpu.CompilerParams(
            dimension_semantics=("parallel",)),
        cost_estimate=cost,
    )(xp, w_seg, b2)

    # unpack (R, P) -> (R*P, 1) and drop padded rows
    return out_p.reshape(R * P, 1)[:B]


def init_params(n_cols, key):
    """Deterministic init matching nn.Linear(4*n_cols, 1) shapes.

    PyTorch stores weight as (1, 4*n_cols); we keep it transposed (4*n_cols, 1).
    """
    D = 4 * n_cols
    kw, kb = jax.random.split(key)
    bound = 1.0 / jnp.sqrt(D)
    w = jax.random.uniform(kw, (D, 1), jnp.float32, -bound, bound)
    b = jax.random.uniform(kb, (1,), jnp.float32, -bound, bound)
    return w, b


def _reference_forward(x, w, b):
    x = jnp.asarray(x, jnp.float32)
    if x.ndim == 1:
        x = x[None, :]
    x = x.reshape(x.shape[0], -1)
    return jax.nn.sigmoid(x @ w + b.reshape(1, 1))


if __name__ == "__main__":
    n_cols = 8          # -> in_features D = 32, lane-pack factor P = 4
    batch = 2

    key = jax.random.PRNGKey(0)
    kx, kp, kx2 = jax.random.split(key, 3)

    # Input in the PyTorch layout (B, 4, n_cols)
    x = jax.random.normal(kx, (batch, 4, n_cols), jnp.float32)
    w, b = init_params(n_cols, kp)

    out = jax.block_until_ready(net_forward(x, w, b))
    ref = _reference_forward(x, w, b)
    assert out.shape == (batch, 1), out.shape
    assert jnp.allclose(out, ref, atol=1e-5, rtol=1e-5), (out, ref)

    # 1-D input path (Net unsqueezes to batch=1)
    x1d = jax.random.normal(kx, (4 * n_cols,), jnp.float32)
    out1 = jax.block_until_ready(net_forward(x1d, w, b))
    ref1 = _reference_forward(x1d, w, b)
    assert out1.shape == (1, 1), out1.shape
    assert jnp.allclose(out1, ref1, atol=1e-5, rtol=1e-5), (out1, ref1)

    # Larger batch with a small tile to exercise the multi-step pipelined grid
    # (including a partial last tile handled by Pallas masking).
    xb = jax.random.normal(kx2, (1000, 4, n_cols), jnp.float32)
    outb = jax.block_until_ready(net_forward(xb, w, b, block_rows=64))
    refb = _reference_forward(xb, w, b)
    assert outb.shape == (1000, 1), outb.shape
    assert jnp.allclose(outb, refb, atol=1e-5, rtol=1e-5)

    print("KERNEL_OK")
</pallas_src>

<mosaic_0001>
module attributes {stable_mosaic.version = 11 : i64} {
  func.func @_net_kernel(%arg0: i32, %arg1: memref<1x128xf32, #tpu.memory_space<vmem>>, %arg2: memref<128x4xf32, #tpu.memory_space<vmem>>, %arg3: memref<1x1xf32, #tpu.memory_space<smem>>, %arg4: memref<1x4xf32, #tpu.memory_space<vmem>>) attributes {dimension_semantics = [#tpu.dimension_semantics<parallel>], iteration_bounds = array<i64: 1>, scalar_prefetch = 0 : i64, scratch_operands = 0 : i64, tpu.core_type = #tpu.core_type<tc>, window_params = [{transform_indices = @transform_0, window_bounds = array<i64: 1, 128>}, {pipeline_mode = #tpu.pipeline_mode<synchronous>, transform_indices = @transform_1, window_bounds = array<i64: 128, 4>}, {transform_indices = @transform_2, window_bounds = array<i64: 1, 1>}, {transform_indices = @transform_3, window_bounds = array<i64: 1, 4>}]} {
    %c0 = arith.constant 0 : index
    %c0_0 = arith.constant 0 : index
    %0 = vector.load %arg1[%c0, %c0_0] : memref<1x128xf32, #tpu.memory_space<vmem>>, vector<1x128xf32>
    %c0_1 = arith.constant 0 : index
    %c0_2 = arith.constant 0 : index
    %1 = vector.load %arg2[%c0_1, %c0_2] : memref<128x4xf32, #tpu.memory_space<vmem>>, vector<128x4xf32>
    %cst = arith.constant dense<0.000000e+00> : vector<1x4xf32>
    %2 = tpu.matmul %0, %1, %cst {dimension_numbers = #tpu.dot_dimension_numbers<[1], [0], [0], [1], [0, 0, 1, 1], [], []>} : vector<1x128xf32>, vector<128x4xf32>, vector<1x4xf32> -> vector<1x4xf32>
    %c0_3 = arith.constant 0 : index
    %c0_4 = arith.constant 0 : index
    %3 = memref.load %arg3[%c0_3, %c0_4] : memref<1x1xf32, #tpu.memory_space<smem>>
    %4 = vector.broadcast %3 : f32 to vector<1x4xf32>
    %5 = arith.addf %2, %4 : vector<1x4xf32>
    %6 = arith.negf %5 : vector<1x4xf32>
    %7 = math.exp %6 : vector<1x4xf32>
    %cst_5 = arith.constant 1.000000e+00 : f32
    %8 = vector.broadcast %cst_5 : f32 to vector<1x4xf32>
    %9 = arith.addf %8, %7 : vector<1x4xf32>
    %10 = arith.divf %8, %9 : vector<1x4xf32>
    %c0_6 = arith.constant 0 : index
    %c0_7 = arith.constant 0 : index
    %11 = vector.load %arg4[%c0_6, %c0_7] : memref<1x4xf32, #tpu.memory_space<vmem>>, vector<1x4xf32>
    tpu.vector_store %arg4[%c0_6, %c0_7], %10 {strides = array<i32>} : memref<1x4xf32, #tpu.memory_space<vmem>>, vector<1x4xf32>,
    return
  }
  func.func @transform_0(%arg0: i32) -> (i32, i32) {
    %c0_i32 = arith.constant 0 : i32
    %c0_i32_0 = arith.constant 0 : i32
    return %arg0, %c0_i32 : i32, i32
  }
  func.func @transform_1(%arg0: i32) -> (i32, i32) {
    %c0_i32 = arith.constant 0 : i32
    %c0_i32_0 = arith.constant 0 : i32
    %c0_i32_1 = arith.constant 0 : i32
    return %c0_i32, %c0_i32_0 : i32, i32
  }
  func.func @transform_2(%arg0: i32) -> (i32, i32) {
    %c0_i32 = arith.constant 0 : i32
    %c0_i32_0 = arith.constant 0 : i32
    %c0_i32_1 = arith.constant 0 : i32
    return %c0_i32, %c0_i32_0 : i32, i32
  }
  func.func @transform_3(%arg0: i32) -> (i32, i32) {
    %c0_i32 = arith.constant 0 : i32
    %c0_i32_0 = arith.constant 0 : i32
    return %arg0, %c0_i32 : i32, i32
  }
}

</mosaic_0001>

<bundles_post_ra>
// kernel: tpu_custom_call.1
= control target key start
LH: loop header
LB: loop body
LE: loop exit
PB: predicated region body
PF: predicated region fallthrough
CT: control target
= control target key end

     0   :  { %s202_s0 = inlined_call_operand.vmem [shape: f32[1,128], index: 0, kind: input, shape index: {}]   ;;  %s203_s1 = inlined_call_operand.vmem [shape: f32[128,4], index: 1, kind: input, shape index: {}]   ;;  %s204_s2 = inlined_call_operand.<no memory space> [shape: f32[1,1], index: 2, kind: input, shape index: {}]   ;;  %s205_s3 = inlined_call_operand.hbm [shape: f32[1,4], index: 3, kind: output, shape index: {}]  }
   0x1   :  { %v32_v0 = vld [vmem:[%s203_s1 + $0x78] sm:$0xff]  ;;  %v31_v1 = vld [vmem:[%s203_s1 + $0x70] sm:$0xff]  ;;  %v30_v2 = vld [vmem:[%s203_s1 + $0x68] sm:$0xff] }
   0x2   :  { %35 = vmatpush.msra.mxu0 %v32_v0  ;;  %v29_v3 = vld [vmem:[%s203_s1 + $0x60] sm:$0xff] }
   0x4   :  { %36 = vmatpush.msra.mxu0 %v31_v1 }
   0x6   :  { %37 = vmatpush.msra.mxu0 %v30_v2 }
   0x7   :  { %9 = vsyncpa [#allocation4], 0  ;;  %v28_v4 = vld [vmem:[%s203_s1 + $0x58] sm:$0xff]  ;;  %v27_v5 = vld [vmem:[%s203_s1 + $0x50] sm:$0xff]  ;;  %v34_v17 = vstv %s204_s2  ;;  %s83_s2 = sshll.u32 %s205_s3, 4  ;;  %vm74_vm3 = vcmask 24576   ;;  %s84_s2 = int_to_ptr.hbm [resolvable:$true] %s83_s2 }
   0x8   :  { %38 = vmatpush.msra.mxu0 %v29_v3  ;;  %v26_v6 = vld [vmem:[%s203_s1 + $0x48] sm:$0xff]  ;;  %v25_v7 = vld [vmem:[%s203_s1 + $0x40] sm:$0xff]  ;;  %v24_v8 = vld [vmem:[%s203_s1 + $0x38] sm:$0xff] }
   0x9   :  { %v23_v9 = vld [vmem:[%s203_s1 + $0x30] sm:$0xff]  ;;  %v22_v10 = vld [vmem:[%s203_s1 + $0x28] sm:$0xff]  ;;  %v21_v11 = vld [vmem:[%s203_s1 + $0x20] sm:$0xff] }
   0xa   :  { %39 = vmatpush.msra.mxu0 %v28_v4  ;;  %v20_v12 = vld [vmem:[%s203_s1 + $0x18] sm:$0xff]  ;;  %v19_v13 = vld [vmem:[%s203_s1 + $0x10] sm:$0xff]  ;;  %v18_v14 = vld [vmem:[%s203_s1 + $0x8] sm:$0xff] }
   0xb   :  { %v17_v15 = vld [vmem:[%s203_s1] sm:$0xff] }
   0xc   :  { %40 = vmatpush.msra.mxu0 %v27_v5  ;;  %v16_v16 = vld [vmem:[%s202_s0] sm:$0x1]  ;;  %s124_s0 = smov [#allocation3]  }
   0xd   :  { %s81_s1 = sshll.u32 %s124_s0, 4  ;;  %s82_s1 = int_to_ptr.vmem [resolvable:$true] %s81_s1 }
   0xe   :  { %41 = vmatpush.msra.mxu0 %v26_v6 }
  0x10   :  { %42 = vmatpush.msra.mxu0 %v25_v7 }
  0x12   :  { %43 = vmatpush.msra.mxu0 %v24_v8 }
  0x14   :  { %44 = vmatpush.msra.mxu0 %v23_v9 }
  0x16   :  { %45 = vmatpush.msra.mxu0 %v22_v10 }
  0x18   :  { %46 = vmatpush.msra.mxu0 %v21_v11 }
  0x1a   :  { %47 = vmatpush.msra.mxu0 %v20_v12 }
  0x1c   :  { %48 = vmatpush.msra.mxu0 %v19_v13 }
  0x1e   :  { %49 = vmatpush.msra.mxu0 %v18_v14 }
  0x20   :  { %50 = vmatpush.msra.mxu0 %v17_v15 }
  0x21   :  { %51 = vmatmul.f32.vlgmr.msra.gmra.mxu0 %v16_v16 }
  0x9e   :  { %v52_v18 = vpop.f32.mrf.mxu0 }
  0x9f   :  { %v53_v19 = vadd.f32 %v52_v18, %v34_v17 }
  0xa1   :  { %v92_v20 = vmul.f32 -1.442695, %v53_v19 }
  0xa3   :  { %94 = vpow2.f32 %v92_v20 }
  0xa9   :  { %v95_v21 = vpop.eup %94 }
  0xaa   :  { %v58_v22 = vadd.f32 1.0, %v95_v21 }
  0xac   :  { %96 = vrcp.f32 %v58_v22  ;;  %v70_v26 = vand.u32 2147483648, %v58_v22  ;;  %v68_v28 = vand.u32 2147483647, %v58_v22  ;;  %vm64_vm1 = vweird.f32 %v58_v22 }
  0xae   :  { %v71_v30 = vor.u32 1.1754944e-38, %v70_v26  ;;  %vm69_vm4 = vcmp.eq.f32.partialorder %v68_v28, 8.507059e+37 }
  0xb2   :  { %v97_v23 = vpop.eup %96 }
  0xb3   :  { %v60_v24 = vmul.f32 %v97_v23, %v58_v22  ;;  %vm65_vm0 = vweird.f32 %v97_v23 }
  0xb4   :  { %vm66_vm2 = vmor %vm64_vm1, %vm65_vm0 }
  0xb5   :  { %v61_v25 = vsub.f32 1.0, %v60_v24 }
  0xb7   :  { %v62_v27 = vmul.f32 %v97_v23, %v61_v25 }
  0xb9   :  { %v63_v29 = vadd.f32 %v97_v23, %v62_v27 }
  0xbb   :  { %v67_v31 = vsel %vm66_vm2, %v97_v23, %v63_v29 }
  0xbc   :  { %v72_v32 = vsel %vm69_vm4, %v71_v30, %v67_v31 }
  0xbd   :  { %75 = vst.msk [vmem:[#allocation3] sm:$0x1] %vm74_vm3, %v72_v32 }
  0xbe   :  { %86 = dma.vmem_to_hbm [thread:$0]  %s82_s1, 16, %s84_s2, [#allocation4]  }
  0xbf   :  { %122 = dma.done.wait [#allocation4], 16  }
  0xc0   :  { %123 = vsyncadd [#allocation4], 4294967280 }
  0xc1   :  { %91 = vsyncpa [#allocation4], 1 }

</bundles_post_ra>
